<compile_context>
chip_gen: v7x
topology: tpu7x:2x2x1
jax: 0.10.0
libtpu: 0.0.40
codegen_flags: <defaults>
</compile_context>

<pallas_src>
import jax
import jax.numpy as jnp
from jax import lax
from jax.experimental import pallas as pl
from jax.experimental.pallas import tpu as pltpu

HIDDEN = 128                      # hidden_dim of AttenModel
OUT_DIM = 128                     # outpu_dim of AttenModel (lane-dense)
NEG_BIG = 9000000000000000.0      # same constant as the PyTorch module


def atten_kernel(x_ref, mask_ref, wqkv_ref, bqkv_ref, wout_ref, bout_ref,
                 out_ref):
    bb, S, obs = x_ref.shape
    out_dim = out_ref.shape[-1]
    mxu_dtype = wqkv_ref.dtype          # bf16 (fast path) or f32 (exact path)

    # ---- fold the batch chunk into matmul rows: [bb*S, obs] ----
    x2d = x_ref[...].reshape(bb * S, obs)

    # ---- fused V/Q/K projection: one [bb*S, obs] x [obs, 3H] matmul ----
    qkv = jnp.dot(x2d.astype(mxu_dtype), wqkv_ref[...],
                  preferred_element_type=jnp.float32) + bqkv_ref[...]
    qkv = jnp.maximum(qkv, 0.0)                       # ReLU (f32, VPU)
    # 128-aligned lane slices; column order [v | q | k] set by the wrapper.
    v = qkv[:, 0 * HIDDEN:1 * HIDDEN].reshape(bb, S, HIDDEN)
    q = qkv[:, 1 * HIDDEN:2 * HIDDEN].reshape(bb, S, HIDDEN)
    k = qkv[:, 2 * HIDDEN:3 * HIDDEN].reshape(bb, S, HIDDEN)

    # ---- per-sample attention scores (contract last axes, no transpose) ----
    scores = jnp.einsum("bqd,bkd->bqk",
                        q.astype(mxu_dtype), k.astype(mxu_dtype),
                        preferred_element_type=jnp.float32)        # [bb,S,S]

    # mask is binary -> select is exactly scores*mask - NEG_BIG*(1-mask)
    logits = jnp.where(mask_ref[...] > 0, scores, -NEG_BIG)

    # ---- softmax over the key axis (all f32) ----
    m = jnp.max(logits, axis=-1, keepdims=True)
    e = jnp.exp(logits - m)
    att = e * pl.reciprocal(jnp.sum(e, axis=-1, keepdims=True))    # exact

    # ---- attention-weighted values, then output projection on [bb*S, H] ----
    ctx = jnp.einsum("bqk,bkd->bqd",
                     att.astype(mxu_dtype), v.astype(mxu_dtype),
                     preferred_element_type=jnp.float32)           # [bb,S,H]
    ctx2d = ctx.reshape(bb * S, HIDDEN)
    out = jnp.dot(ctx2d.astype(mxu_dtype), wout_ref[...],
                  preferred_element_type=jnp.float32) + bout_ref[...]
    out_ref[...] = jnp.maximum(out, 0.0).reshape(bb, S, out_dim)


def init_params(key, input_dim, hidden_dim, output_dim):
    """PyTorch-Linear-style init.  Weights stored as [in, out]."""
    def linear_init(k, fan_in, fan_out):
        kw, kb = jax.random.split(k)
        bound = 1.0 / jnp.sqrt(float(fan_in))
        w = jax.random.uniform(kw, (fan_in, fan_out), jnp.float32, -bound, bound)
        b = jax.random.uniform(kb, (1, fan_out), jnp.float32, -bound, bound)
        return w, b

    kv, kk, kq, ko = jax.random.split(key, 4)
    wv, bv = linear_init(kv, input_dim, hidden_dim)
    wk, bk = linear_init(kk, input_dim, hidden_dim)
    wq, bq = linear_init(kq, input_dim, hidden_dim)
    wo, bo = linear_init(ko, hidden_dim, output_dim)
    return {
        # individual weights (reference path)
        "wv": wv, "bv": bv, "wk": wk, "bk": bk, "wq": wq, "bq": bq,
        "wout": wo, "bout": bo,
        # fused QKV (kernel path); column order [v | q | k] matches kernel slices
        "wqkv": jnp.concatenate([wv, wq, wk], axis=1),     # [obs, 3H]
        "bqkv": jnp.concatenate([bv, bq, bk], axis=1),     # [1, 3H]
    }


def atten_forward(params, x, mask, *, block_batch=32, use_bf16=True):
    """x: [B, S, input_dim], mask: [B, S, S] -> [B, S, output_dim].

    block_batch: samples folded into one grid step (32*S=256 rows fills the
    v6e/v7x MXU; raise to 128-512 for large, HBM-streaming-bound batches).
    use_bf16:    bf16 MXU operands with f32 accumulation (default). False ->
                 exact f32 arithmetic (matches the reference to ~1e-5).
    """
    if x.ndim == 2:            # mirror a possible unbatched call
        x = x[None]
    if mask.ndim == 2:
        mask = mask[None]
    B, S, obs = x.shape
    wqkv, bqkv = params["wqkv"], params["bqkv"]
    wout, bout = params["wout"], params["bout"]
    out_dim = wout.shape[1]

    mxu_dtype = jnp.bfloat16 if use_bf16 else jnp.float32
    wqkv_k = wqkv.astype(mxu_dtype)    # cast weights once, outside the kernel
    wout_k = wout.astype(mxu_dtype)

    # Samples per grid step: fill MXU rows, but keep >=2 "parallel" grid steps
    # whenever B > 1 so v7x's second TensorCore is not left idle.
    bb = max(1, min(block_batch, B))
    if B > 1 and pl.cdiv(B, bb) < 2:
        bb = pl.cdiv(B, 2)
    n_chunks = pl.cdiv(B, bb)
    b_pad = n_chunks * bb
    if b_pad != B:
        # padded samples: zero x + zero mask -> uniform softmax, no NaNs;
        # their rows are sliced off below.
        x = jnp.pad(x, ((0, b_pad - B), (0, 0), (0, 0)))
        mask = jnp.pad(mask, ((0, b_pad - B), (0, 0), (0, 0)))

    out = pl.pallas_call(
        atten_kernel,
        out_shape=jax.ShapeDtypeStruct((b_pad, S, out_dim), jnp.float32),
        grid=(n_chunks,),
        in_specs=[
            pl.BlockSpec((bb, S, obs), lambda i: (i, 0, 0)),   # x chunk
            pl.BlockSpec((bb, S, S), lambda i: (i, 0, 0)),     # mask chunk
            pl.BlockSpec(wqkv_k.shape, lambda i: (0, 0)),      # fused QKV W
            pl.BlockSpec(bqkv.shape, lambda i: (0, 0)),        # fused QKV b
            pl.BlockSpec(wout_k.shape, lambda i: (0, 0)),      # out W
            pl.BlockSpec(bout.shape, lambda i: (0, 0)),        # out b
        ],
        out_specs=pl.BlockSpec((bb, S, out_dim), lambda i: (i, 0, 0)),
        compiler_params=pltpu.CompilerParams(
            dimension_semantics=("parallel",)),   # batch chunks over TCs
    )(x, mask, wqkv_k, bqkv, wout_k, bout)
    return out[:B]


def atten_reference(params, x, mask):
    """Pure-JAX reference, semantics identical to the PyTorch forward."""
    hi = lax.Precision.HIGHEST
    lin = lambda a, w, b: jnp.matmul(a, w, precision=hi) + b
    v = jax.nn.relu(lin(x, params["wv"], params["bv"]))
    q = jax.nn.relu(lin(x, params["wq"], params["bq"]))
    k = jax.nn.relu(lin(x, params["wk"], params["bk"]))
    scores = jnp.einsum("bqd,bkd->bqk", q, k, precision=hi)
    logits = scores * mask - NEG_BIG * (1.0 - mask)
    att = jax.nn.softmax(logits, axis=-1)
    out = jax.nn.relu(lin(jnp.matmul(att, v, precision=hi),
                          params["wout"], params["bout"]))
    return out


if __name__ == "__main__":
    B, SEQ, OBS = 2, 8, 32

    key = jax.random.PRNGKey(0)
    kp, kx, km = jax.random.split(key, 3)

    params = init_params(kp, OBS, HIDDEN, OUT_DIM)

    x = jax.random.normal(kx, (B, SEQ, OBS), jnp.float32)
    rand_mask = (jax.random.uniform(km, (B, SEQ, SEQ)) > 0.5).astype(jnp.float32)
    # guarantee the diagonal so no row is fully masked (same as RL env usage)
    mask = jnp.maximum(rand_mask, jnp.eye(SEQ, dtype=jnp.float32)[None])

    ref = atten_reference(params, x, mask)

    # exact-arithmetic mode: f32 MXU operands, verifies semantics tightly
    out_exact = atten_forward(params, x, mask, use_bf16=False)
    jax.block_until_ready(out_exact)
    assert out_exact.shape == (B, SEQ, OUT_DIM)
    assert jnp.allclose(out_exact, ref, rtol=1e-5, atol=1e-5)

    # fast default: bf16 MXU operands, f32 accumulation / softmax
    out_fast = atten_forward(params, x, mask)
    jax.block_until_ready(out_fast)
    assert out_fast.shape == (B, SEQ, OUT_DIM)
    assert jnp.allclose(out_fast, ref, rtol=5e-2, atol=5e-2)

    print("KERNEL_OK")
</pallas_src>

<mosaic_0001>
module attributes {stable_mosaic.version = 11 : i64} {
  func.func @atten_kernel(%arg0: i32, %arg1: memref<1x8x32xf32, #tpu.memory_space<vmem>>, %arg2: memref<1x8x8xf32, #tpu.memory_space<vmem>>, %arg3: memref<32x384xf32, #tpu.memory_space<vmem>>, %arg4: memref<1x384xf32, #tpu.memory_space<vmem>>, %arg5: memref<128x128xf32, #tpu.memory_space<vmem>>, %arg6: memref<1x128xf32, #tpu.memory_space<vmem>>, %arg7: memref<1x8x128xf32, #tpu.memory_space<vmem>>) attributes {dimension_semantics = [#tpu.dimension_semantics<parallel>], iteration_bounds = array<i64: 2>, scalar_prefetch = 0 : i64, scratch_operands = 0 : i64, tpu.core_type = #tpu.core_type<tc>, window_params = [{transform_indices = @transform_0, window_bounds = array<i64: 1, 8, 32>}, {transform_indices = @transform_1, window_bounds = array<i64: 1, 8, 8>}, {pipeline_mode = #tpu.pipeline_mode<synchronous>, transform_indices = @transform_2, window_bounds = array<i64: 32, 384>}, {pipeline_mode = #tpu.pipeline_mode<synchronous>, transform_indices = @transform_3, window_bounds = array<i64: 1, 384>}, {pipeline_mode = #tpu.pipeline_mode<synchronous>, transform_indices = @transform_4, window_bounds = array<i64: 128, 128>}, {pipeline_mode = #tpu.pipeline_mode<synchronous>, transform_indices = @transform_5, window_bounds = array<i64: 1, 128>}, {transform_indices = @transform_6, window_bounds = array<i64: 1, 8, 128>}]} {
    %c0 = arith.constant 0 : index
    %c0_0 = arith.constant 0 : index
    %c0_1 = arith.constant 0 : index
    %0 = vector.load %arg1[%c0, %c0_0, %c0_1] : memref<1x8x32xf32, #tpu.memory_space<vmem>>, vector<1x8x32xf32>
    %1 = vector.shape_cast %0 : vector<1x8x32xf32> to vector<8x32xf32>
    %c0_2 = arith.constant 0 : index
    %c0_3 = arith.constant 0 : index
    %2 = vector.load %arg3[%c0_2, %c0_3] : memref<32x384xf32, #tpu.memory_space<vmem>>, vector<32x384xf32>
    %cst = arith.constant dense<0.000000e+00> : vector<8x384xf32>
    %3 = tpu.matmul %1, %2, %cst {dimension_numbers = #tpu.dot_dimension_numbers<[1], [0], [0], [1], [0, 0, 1, 1], [], []>} : vector<8x32xf32>, vector<32x384xf32>, vector<8x384xf32> -> vector<8x384xf32>
    %c0_4 = arith.constant 0 : index
    %c0_5 = arith.constant 0 : index
    %4 = vector.load %arg4[%c0_4, %c0_5] : memref<1x384xf32, #tpu.memory_space<vmem>>, vector<1x384xf32>
    %5 = vector.broadcast %4 : vector<1x384xf32> to vector<8x384xf32>
    %6 = arith.addf %3, %5 : vector<8x384xf32>
    %cst_6 = arith.constant 0.000000e+00 : f32
    %7 = vector.broadcast %cst_6 : f32 to vector<8x384xf32>
    %8 = arith.maximumf %6, %7 : vector<8x384xf32>
    %9 = vector.extract_strided_slice %8 {offsets = [0, 0], sizes = [8, 128], strides = [1, 1]} : vector<8x384xf32> to vector<8x128xf32>
    %10 = vector.shape_cast %9 : vector<8x128xf32> to vector<1x8x128xf32>
    %11 = vector.extract_strided_slice %8 {offsets = [0, 128], sizes = [8, 128], strides = [1, 1]} : vector<8x384xf32> to vector<8x128xf32>
    %12 = vector.shape_cast %11 : vector<8x128xf32> to vector<1x8x128xf32>
    %13 = vector.extract_strided_slice %8 {offsets = [0, 256], sizes = [8, 128], strides = [1, 1]} : vector<8x384xf32> to vector<8x128xf32>
    %14 = vector.shape_cast %13 : vector<8x128xf32> to vector<1x8x128xf32>
    "tpu.trace_start"() <{level = 10 : i32, message = "bqd,bkd->bqk"}> : () -> ()
    %cst_7 = arith.constant dense<0.000000e+00> : vector<1x8x8xf32>
    %15 = tpu.matmul %12, %14, %cst_7 {dimension_numbers = #tpu.dot_dimension_numbers<[2], [2], [1], [1], [0, 0, 0, 1, 1, 1], [0], [0]>} : vector<1x8x128xf32>, vector<1x8x128xf32>, vector<1x8x8xf32> -> vector<1x8x8xf32>
    "tpu.trace_stop"() : () -> ()
    %c0_8 = arith.constant 0 : index
    %c0_9 = arith.constant 0 : index
    %c0_10 = arith.constant 0 : index
    %16 = vector.load %arg2[%c0_8, %c0_9, %c0_10] : memref<1x8x8xf32, #tpu.memory_space<vmem>>, vector<1x8x8xf32>
    %cst_11 = arith.constant 0.000000e+00 : f32
    %17 = vector.broadcast %cst_11 : f32 to vector<1x8x8xf32>
    %18 = arith.cmpf ogt, %16, %17 : vector<1x8x8xf32>
    %cst_12 = arith.constant -9.000000e+15 : f32
    %19 = vector.broadcast %cst_12 : f32 to vector<1x8x8xf32>
    %20 = arith.select %18, %15, %19 : vector<1x8x8xi1>, vector<1x8x8xf32>
    %cst_13 = arith.constant dense<0xFF800000> : vector<1x8xf32>
    %21 = vector.multi_reduction <maximumf>, %20, %cst_13 [2] : vector<1x8x8xf32> to vector<1x8xf32>
    %22 = vector.shape_cast %21 : vector<1x8xf32> to vector<1x8x1xf32>
    %23 = vector.broadcast %22 : vector<1x8x1xf32> to vector<1x8x8xf32>
    %24 = arith.subf %20, %23 : vector<1x8x8xf32>
    %25 = math.exp %24 : vector<1x8x8xf32>
    %cst_14 = arith.constant dense<0.000000e+00> : vector<1x8xf32>
    %26 = vector.multi_reduction <add>, %25, %cst_14 [2] : vector<1x8x8xf32> to vector<1x8xf32>
    %27 = vector.shape_cast %26 : vector<1x8xf32> to vector<1x8x1xf32>
    %28 = tpu.reciprocal %27 : vector<1x8x1xf32> -> vector<1x8x1xf32>
    %29 = vector.broadcast %28 : vector<1x8x1xf32> to vector<1x8x8xf32>
    %30 = arith.mulf %25, %29 : vector<1x8x8xf32>
    "tpu.trace_start"() <{level = 10 : i32, message = "bqk,bkd->bqd"}> : () -> ()
    %cst_15 = arith.constant dense<0.000000e+00> : vector<1x8x128xf32>
    %31 = tpu.matmul %30, %10, %cst_15 {dimension_numbers = #tpu.dot_dimension_numbers<[2], [1], [1], [2], [0, 0, 0, 1, 1, 2], [0], [0]>} : vector<1x8x8xf32>, vector<1x8x128xf32>, vector<1x8x128xf32> -> vector<1x8x128xf32>
    "tpu.trace_stop"() : () -> ()
    %32 = vector.shape_cast %31 : vector<1x8x128xf32> to vector<8x128xf32>
    %c0_16 = arith.constant 0 : index
    %c0_17 = arith.constant 0 : index
    %33 = vector.load %arg5[%c0_16, %c0_17] : memref<128x128xf32, #tpu.memory_space<vmem>>, vector<128x128xf32>
    %cst_18 = arith.constant dense<0.000000e+00> : vector<8x128xf32>
    %34 = tpu.matmul %32, %33, %cst_18 {dimension_numbers = #tpu.dot_dimension_numbers<[1], [0], [0], [1], [0, 0, 1, 1], [], []>} : vector<8x128xf32>, vector<128x128xf32>, vector<8x128xf32> -> vector<8x128xf32>
    %c0_19 = arith.constant 0 : index
    %c0_20 = arith.constant 0 : index
    %35 = vector.load %arg6[%c0_19, %c0_20] : memref<1x128xf32, #tpu.memory_space<vmem>>, vector<1x128xf32>
    %36 = vector.broadcast %35 : vector<1x128xf32> to vector<8x128xf32>
    %37 = arith.addf %34, %36 : vector<8x128xf32>
    %cst_21 = arith.constant 0.000000e+00 : f32
    %38 = vector.broadcast %cst_21 : f32 to vector<8x128xf32>
    %39 = arith.maximumf %37, %38 : vector<8x128xf32>
    %40 = vector.shape_cast %39 : vector<8x128xf32> to vector<1x8x128xf32>
    %c0_22 = arith.constant 0 : index
    %c0_23 = arith.constant 0 : index
    %c0_24 = arith.constant 0 : index
    %41 = vector.load %arg7[%c0_22, %c0_23, %c0_24] : memref<1x8x128xf32, #tpu.memory_space<vmem>>, vector<1x8x128xf32>
    tpu.vector_store %arg7[%c0_22, %c0_23, %c0_24], %40 {strides = array<i32>} : memref<1x8x128xf32, #tpu.memory_space<vmem>>, vector<1x8x128xf32>,
    return
  }
  func.func @transform_0(%arg0: i32) -> (i32, i32, i32) {
    %c0_i32 = arith.constant 0 : i32
    %c0_i32_0 = arith.constant 0 : i32
    %c0_i32_1 = arith.constant 0 : i32
    return %arg0, %c0_i32, %c0_i32_0 : i32, i32, i32
  }
  func.func @transform_1(%arg0: i32) -> (i32, i32, i32) {
    %c0_i32 = arith.constant 0 : i32
    %c0_i32_0 = arith.constant 0 : i32
    %c0_i32_1 = arith.constant 0 : i32
    return %arg0, %c0_i32, %c0_i32_0 : i32, i32, i32
  }
  func.func @transform_2(%arg0: i32) -> (i32, i32) {
    %c0_i32 = arith.constant 0 : i32
    %c0_i32_0 = arith.constant 0 : i32
    %c0_i32_1 = arith.constant 0 : i32
    return %c0_i32, %c0_i32_0 : i32, i32
  }
  func.func @transform_3(%arg0: i32) -> (i32, i32) {
    %c0_i32 = arith.constant 0 : i32
    %c0_i32_0 = arith.constant 0 : i32
    %c0_i32_1 = arith.constant 0 : i32
    return %c0_i32, %c0_i32_0 : i32, i32
  }
  func.func @transform_4(%arg0: i32) -> (i32, i32) {
    %c0_i32 = arith.constant 0 : i32
    %c0_i32_0 = arith.constant 0 : i32
    %c0_i32_1 = arith.constant 0 : i32
    return %c0_i32, %c0_i32_0 : i32, i32
  }
  func.func @transform_5(%arg0: i32) -> (i32, i32) {
    %c0_i32 = arith.constant 0 : i32
    %c0_i32_0 = arith.constant 0 : i32
    %c0_i32_1 = arith.constant 0 : i32
    return %c0_i32, %c0_i32_0 : i32, i32
  }
  func.func @transform_6(%arg0: i32) -> (i32, i32, i32) {
    %c0_i32 = arith.constant 0 : i32
    %c0_i32_0 = arith.constant 0 : i32
    %c0_i32_1 = arith.constant 0 : i32
    return %arg0, %c0_i32, %c0_i32_0 : i32, i32, i32
  }
}

</mosaic_0001>

<bundles_post_ra>
// kernel: tpu_custom_call.1
= control target key start
LH: loop header
LB: loop body
LE: loop exit
PB: predicated region body
PF: predicated region fallthrough
CT: control target
= control target key end

     0   :  { %s1660_s0 = inlined_call_operand.hbm [shape: f32[2,8,32], index: 0, kind: input, shape index: {}]   ;;  %s1661_s1 = inlined_call_operand.hbm [shape: f32[2,8,8], index: 1, kind: input, shape index: {}]   ;;  %s1662_s2 = inlined_call_operand.hbm [shape: f32[32,384], index: 2, kind: input, shape index: {}]   ;;  %s1663_s3 = inlined_call_operand.vmem [shape: f32[1,384], index: 3, kind: input, shape index: {}]   ;;  %s1664_s4 = inlined_call_operand.hbm [shape: f32[128,128], index: 4, kind: input, shape index: {}]   ;;  %s1665_s5 = inlined_call_operand.vmem [shape: f32[1,128], index: 5, kind: input, shape index: {}]   ;;  %s1666_s6 = inlined_call_operand.hbm [shape: f32[2,8,128], index: 6, kind: output, shape index: {}]  }
   0x1   :  { %1671 = sst [smem:[#allocation17_spill]] %s1662_s2 }
   0x2   :  { %1672 = sst [smem:[#allocation18_spill]] %s1664_s4 }
   0x3   :  { %11 = vsyncpa [#allocation3], 0 }
   0x4   :  { %13 = vsyncpa [#allocation3 + $0x1], 0 }
   0x5   :  { %14 = vsyncpa [#allocation6], 0 }
   0x6   :  { %16 = vsyncpa [#allocation6 + $0x1], 0 }
   0x7   :  { %17 = vsyncpa [#allocation9], 0 }
   0x8   :  { %18 = vsyncpa [#allocation4], 0 }
   0x9   :  { %20 = vsyncpa [#allocation4 + $0x1], 0  ;;  %s1359_s21 = smov 0   ;;  %s1361_s22 = smov 0  }
   0xa   :  { %s1363_s23 = smov 0   ;;  %s1365_s24 = smov 0  }
   0xb LB: > { %s1380_s25 = sadd.s32 4294967295, %s1310_s24   ;;  %s890_s26 = sadd.s32 4294967294, %s1310_s24   ;;  %s1310_s24 = sphi %s1365_s24, %s1696_s24   ;;  %s1306_s23 = sphi %s1363_s23, %s1695_s23   ;;  %s1302_s22 = sphi %s1361_s22, %s1694_s22   ;;  %s1298_s21 = sphi %s1359_s21, %s1693_s21  }
   0xc   : > { %p46_p0 = scmp.ne.s32.totalorder %s1302_s22, %s1298_s21  ;;  %p1667_p1 = scmp.eq.s32.totalorder %s1380_s25, 0 }
   0xd   : > { %p186_p3 = scmp.eq.s32.totalorder %s890_s26, 1  ;;  %p891_p5 = scmp.ge.s32.totalorder %s1310_s24, 1 }
   0xe   : > { %p1389_p4 = por %p1667_p1, %p46_p0  ;;  %p193_p7 = scmp.lt.s32.totalorder %s1310_s24, 3 }
   0xf   : > { %p1394_p6 = por %p186_p3, %p46_p0  ;;  %s1312_s30 = smov [#allocation7]  }
  0x10   : > { %s1673_s27 = scalar_select %p1389_p4, 1, 0 }
  0x11   : > { %s1674_s28 = scalar_select %p1394_p6, 1, 0 }
  0x12   : > { %p1399_p8 = pnand %p891_p5, %p193_p7  ;;  %s205_s7 = sshll.u32 %s1312_s30, 4  ;;  %s1403_s7 = int_to_ptr.vmem [resolvable:$true] %s205_s7 }
  0x13   : > { %s1313_s9 = smov [#allocation8]   ;;  %s1677_s2 = sld [smem:[#allocation17_spill]] }
  0x14   : > { %s1675_s29 = scalar_select %p1399_p8, 1, 0 }
  0x15   : > { %p1047_p9 = pneg %p1399_p8  ;;  %s221_s10 = sshll.u32 %s1313_s9, 4  ;;  %s1414_s10 = int_to_ptr.vmem [resolvable:$true] %s221_s10 }
  0x17   : > { %p1410_p11 = pnand %p1047_p9, %p1667_p1 }
  0x19   : > { %s1116_s13 = scalar_lea.hbm %s1677_s2, 1536  ;;  %p1118_p13 = pneg %p1410_p11 }
  0x1a   : > { %p1117_p12 = scmp.ne.s32.totalorder %s1677_s2, %s1116_s13  ;;  %p1123_p5 = scmp.lt.u32.totalorder %s1116_s13, %s1677_s2 }
  0x1c   : > { %p1119_p0 = pnand %p1118_p13, %p1117_p12 }
  0x1e   : > { %p1120_p3 = pneg %p1119_p0 }
  0x20   : > { %p1125_p7 = pnand %p1123_p5, %p1120_p3 }
  0x22   : > { %1128 = shalt.err (!%p1125_p7)
}
  0x23   : > { %s1129_s18 = scalar_lea.vmem %s1403_s7, 1536  ;;  %p1137_p2 = scmp.lt.s32.totalorder %s1403_s7, %s1403_s7 }
  0x24   : > { %p1130_p9 = scmp.ne.s32.totalorder %s1403_s7, %s1129_s18  ;;  %p1138_p12 = scmp.lt.s32.totalorder %s1129_s18, %s1129_s18 }
  0x26   : > { %p1132_p10 = pnand %p1130_p9, %p1118_p13  ;;  %p1139_p0 = por %p1138_p12, %p1137_p2 }
  0x28   : > { %p1133_p1 = pneg %p1132_p10 }
  0x2a   : > { %p1140_p6 = pnand %p1139_p0, %p1133_p1 }
  0x2c   : > { %1143 = shalt.err (!%p1140_p6)
}
  0x2d   : > { %s1314_s19 = smov 384   ;;  %s1315_s20 = smov 24  }
  0x2e   : > { %1050 = dma.hbm_to_vmem [thread:$0]  (!%p1410_p11), %s1677_s2, 1536, %s1403_s7, [#allocation6], %s1314_s19, %s1314_s19, %s1315_s20  }
  0x2f   : > { %s1678_s4 = sld [smem:[#allocation18_spill]] }
  0x35   : > { %s1144_s12 = scalar_lea.hbm %s1678_s4, 2048 }
  0x36   : > { %p1145_p2 = scmp.ne.s32.totalorder %s1678_s4, %s1144_s12  ;;  %p1151_p10 = scmp.lt.u32.totalorder %s1144_s12, %s1678_s4 }
  0x38   : > { %p1147_p1 = pnand %p1145_p2, %p1118_p13 }
  0x3a   : > { %p1148_p6 = pneg %p1147_p1 }
  0x3c   : > { %p1153_p3 = pnand %p1151_p10, %p1148_p6 }
  0x3e   : > { %1156 = shalt.err (!%p1153_p3)
}
  0x3f   : > { %s1157_s7 = scalar_lea.vmem %s1414_s10, 2048  ;;  %p1165_p12 = scmp.lt.s32.totalorder %s1414_s10, %s1414_s10 }
  0x40   : > { %p1158_p5 = scmp.ne.s32.totalorder %s1414_s10, %s1157_s7  ;;  %p1166_p0 = scmp.lt.s32.totalorder %s1157_s7, %s1157_s7 }
  0x42   : > { %p1160_p7 = pnand %p1158_p5, %p1118_p13  ;;  %p1167_p2 = por %p1166_p0, %p1165_p12 }
  0x44   : > { %p1161_p9 = pneg %p1160_p7 }
  0x46   : > { %p1168_p1 = pnand %p1167_p2, %p1161_p9 }
  0x48   : > { %1171 = shalt.err (!%p1168_p1)
}
  0x49   : > { %s1316_s17 = smov 128   ;;  %s1317_s18 = smov 8  }
  0x4a   : > { %1053 = dma.hbm_to_vmem [thread:$0]  (!%p1410_p11), %s1678_s4, 2048, %s1414_s10, [#allocation9], %s1316_s17, %s1316_s17, %s1317_s18  }
  0x4b   : > { %s1469_s26 = sadd.s32 1, %s1310_s24   ;;  %s33_s9 = sadd.s32 1, %s1306_s23 }
  0x4c   : > { %s30_s30 = ssub.s32 %s1310_s24, %s1469_s26  ;;  %p40_p6 = scmp.ne.s32.totalorder %s1306_s23, %s1302_s22 }
  0x4d   : > { %p31_p13 = scmp.eq.s32.totalorder %s30_s30, 0  ;;  %p41_p10 = scmp.eq.s32.totalorder %s1310_s24, 0 }
  0x4e   : > { %p1680_p5 = scmp.eq.s32.totalorder %s1380_s25, 1  ;;  %p1067_p9 = scmp.lt.s32.totalorder %s1310_s24, 2 }
  0x4f   : > { %s1478_s11 = scalar_select %p31_p13, %s1306_s23, %s33_s9  }
  0x50   : > { %p42_p3 = por %p41_p10, %p40_p6  ;;  %p1482_p7 = por %p1680_p5, %p40_p6 }
  0x51   : > { %1679 = sst [smem:[#allocation16_spill]] %s1478_s11  ;;  %s238_s8 = sand.u32 1, %s1306_s23  }
  0x52   : > { %s1681_s12 = scalar_select %p1482_p7, 1, 0 }
  0x53   : > { %s1488_s10 = sshll.u32 %s238_s8, 3  ;;  %s896_s13 = sshll.u32 %s1310_s24, 7 }
  0x54   : > { %s1494_s16 = scalar_lea.hbm %s1660_s0, %s896_s13  ;;  %s242_s7 = scalar_lea.vmem [#allocation2], %s1488_s10 }
  0x55   : > { %s249_s17 = sshll.u32 %s242_s7, 4  ;;  %p1499_p11 = pnand %p1067_p9, %p42_p3  ;;  %s1497_s17 = int_to_ptr.vmem [resolvable:$true] %s249_s17 }
  0x56   : > { %s1506_s30 = scalar_lea.hbm %s1661_s1, %s896_s13  ;;  %s256_s9 = sand.u32 1, %s1310_s24  }
  0x57   : > { %s239_s14 = scalar_lea.sflag [#allocation3], %s238_s8  ;;  %s1172_s15 = scalar_lea.hbm %s1494_s16, 128 }
  0x58   : > { %p1173_p12 = scmp.ne.s32.totalorder %s1494_s16, %s1172_s15  ;;  %p1174_p0 = pneg %p1499_p11 }
  0x59   : > { %s1177_s4 = scalar_lea.hbm %s1660_s0, 256  ;;  %p1178_p13 = scmp.lt.u32.totalorder %s1494_s16, %s1660_s0 }
  0x5a   : > { %p1175_p2 = pnand %p1174_p0, %p1173_p12  ;;  %p1179_p6 = scmp.lt.u32.totalorder %s1177_s4, %s1172_s15 }
  0x5b   : > { %p1181_p3 = scmp.lt.u32.totalorder %s1172_s15, %s1494_s16 }
  0x5c   : > { %p1176_p1 = pneg %p1175_p2  ;;  %p1180_p10 = por %p1179_p6, %p1178_p13 }
  0x5e   : > { %p1182_p5 = por %p1181_p3, %p1180_p10 }
  0x60   : > { %p1183_p9 = pnand %p1182_p5, %p1176_p1 }
  0x62   : > { %1186 = shalt.err (!%p1183_p9)
}
  0x63   : > { %s1187_s8 = scalar_lea.vmem %s1497_s17, 128  ;;  %s1318_s2 = smov [#allocation2]  }
  0x64   : > { %p1188_p12 = scmp.ne.s32.totalorder %s1497_s17, %s1187_s8  ;;  %s1192_s13 = sshll.u32 %s1318_s2, 4  ;;  %s1193_s13 = int_to_ptr.vmem [resolvable:$false] %s1192_s13 }
  0x65   : > { %s1194_s11 = scalar_lea.vmem %s1193_s13, 256  ;;  %p1195_p4 = scmp.lt.s32.totalorder %s1497_s17, %s1193_s13 }
  0x66   : > { %p1190_p2 = pnand %p1188_p12, %p1174_p0  ;;  %p1196_p13 = scmp.lt.s32.totalorder %s1194_s11, %s1187_s8 }
  0x68   : > { %p1191_p7 = pneg %p1190_p2  ;;  %p1197_p6 = por %p1196_p13, %p1195_p4 }
  0x6a   : > { %p1198_p10 = pnand %p1197_p6, %p1191_p7 }
  0x6c   : > { %1201 = shalt.err (!%p1198_p10)
}
  0x6d   : > { %1057 = dma.hbm_to_vmem [thread:$0]  (!%p1499_p11), %s1494_s16, 128, %s1497_s17, %s239_s14  }
  0x6e   : > { %s260_s4 = scalar_lea.vmem [#allocation5], %s1488_s10  ;;  %s257_s15 = scalar_lea.sflag [#allocation6], %s256_s9 }
  0x6f   : > { %s267_s20 = sshll.u32 %s260_s4, 4  ;;  %s1202_s7 = scalar_lea.hbm %s1506_s30, 128  ;;  %s268_s20 = int_to_ptr.vmem [resolvable:$true] %s267_s20 }
  0x70   : > { %p1203_p4 = scmp.ne.s32.totalorder %s1506_s30, %s1202_s7  ;;  %s1207_s2 = scalar_lea.hbm %s1661_s1, 256 }
  0x71   : > { %p1208_p3 = scmp.lt.u32.totalorder %s1506_s30, %s1661_s1  ;;  %p1209_p5 = scmp.lt.u32.totalorder %s1207_s2, %s1202_s7 }
  0x72   : > { %p1205_p7 = pnand %p1203_p4, %p1174_p0  ;;  %p1211_p12 = scmp.lt.u32.totalorder %s1202_s7, %s1506_s30 }
  0x73   : > { %p1210_p9 = por %p1209_p5, %p1208_p3 }
  0x74   : > { %p1206_p1 = pneg %p1205_p7 }
  0x75   : > { %p1212_p2 = por %p1211_p12, %p1210_p9 }
  0x77   : > { %p1213_p13 = pnand %p1212_p2, %p1206_p1 }
  0x79   : > { %1216 = shalt.err (!%p1213_p13)
}
  0x7a   : > { %s1217_s10 = scalar_lea.vmem %s268_s20, 128  ;;  %s1319_s16 = smov [#allocation5]  }
  0x7b   : > { %p1218_p6 = scmp.ne.s32.totalorder %s268_s20, %s1217_s10  ;;  %s1222_s17 = sshll.u32 %s1319_s16, 4  ;;  %s1223_s17 = int_to_ptr.vmem [resolvable:$false] %s1222_s17 }
  0x7c   : > { %s1224_s9 = scalar_lea.vmem %s1223_s17, 256  ;;  %p1225_p7 = scmp.lt.s32.totalorder %s268_s20, %s1223_s17 }
  0x7d   : > { %p1220_p10 = pnand %p1218_p6, %p1174_p0  ;;  %p1226_p8 = scmp.lt.s32.totalorder %s1224_s9, %s1217_s10 }
  0x7f   : > { %p1221_p4 = pneg %p1220_p10  ;;  %p1227_p3 = por %p1226_p8, %p1225_p7 }
  0x81   : > { %p1228_p5 = pnand %p1227_p3, %p1221_p4 }
  0x83   : > { %1231 = shalt.err (!%p1228_p5)
}
  0x84   : > { %1060 = dma.hbm_to_vmem [thread:$0]  (!%p1499_p11), %s1506_s30, 128, %s268_s20, %s257_s15  }
  0x85   : > { %p1683_p1 = scmp.ne.s32.totalorder %s1675_s29, 0 }
  0x86   : > { %s1559_s14 = sand.u32 (!%p1683_p1), 1, %s1302_s22   ;;  %p1684_p8 = scmp.ne.s32.totalorder (!%p1683_p1), %s1673_s27, 0 }
  0x87   : > { %276 = sbr.rel (%p1683_p1) target bundleno = 1361 (0x551), region = 44  ;;  %s1562_s4 = sshll.u32 (!%p1683_p1), %s1559_s14, 3 }
  0x88   : > { %s279_s7 = scalar_lea.sflag (!%p1683_p1), [#allocation3], %s1559_s14  ;;  %s282_s19 = scalar_lea.vmem (!%p1683_p1), [#allocation2], %s1562_s4 }
  0x8e   : > { %1277 = dma.done.wait (%p1684_p8), %s279_s7, 128  }
  0x8f   : > { %1279 = vsyncadd (%p1684_p8), %s279_s7, 4294967168  ;;  %s287_s29 = sand.u32 1, %s1380_s25   ;;  %s291_s30 = scalar_lea.vmem [#allocation5], %s1562_s4 }
  0x90   : > { %s288_s18 = scalar_lea.sflag [#allocation6], %s287_s29 }
  0x91   : > { %1281 = dma.done.wait (%p1684_p8), %s288_s18, 128  }
  0x92   : > { %1283 = vsyncadd (%p1684_p8), %s288_s18, 4294967168  ;;  %p1685_p11 = scmp.eq.s32.totalorder %s1380_s25, 0 }
  0x94   : > { %1285 = dma.done.wait (%p1685_p11), [#allocation6], 1536   ;;  %p1686_p0 = pmov %p1685_p11 }
  0x96   : > { %1287 = vsyncadd (%p1686_p0), [#allocation6], 4294965760  ;;  %p1687_p9 = pmov %p1686_p0 }
  0x97   : > { %p1688_p12 = pmov %p1686_p0 }
  0x98   : > { %1289 = dma.done.wait (%p1687_p9), [#allocation9], 2048  }
  0x99   : > { %1291 = vsyncadd (%p1688_p12), [#allocation9], 4294965248  ;;  %v1320_v0 = vmov 0.0   ;;  %v1321_v1 = vmov 0.0|0.0   ;;  %vm1322_vm0 = vmmov 0   ;;  %v335_v2 = vld [vmem:[#allocation7 + $0x8] sm:$0xff]  ;;  %v348_v21 = vlaneseq }
  0x9a   : > { %431 = vmatprep.mubr.f32.mxu1 %v1320_v0  ;;  %1009 = vmatprep.subr.bf16.mxu0 %v1321_v1  ;;  %v338_v3 = vld [vmem:[#allocation7 + $0x20] sm:$0xff]  ;;  %v337_v6 = vld [vmem:[#allocation7 + $0x18] sm:$0xff]  ;;  %v344_v8 = vld [vmem:[#allocation7 + $0x50] sm:$0xff]  ;;  %vm363_vm1 = vcmask 261120   ;;  %vm584_vm3 = vcmask 64512   ;;  %s910_s2 = sshll.u32 %s1380_s25, 7 }
  0x9b   : > { %992 = vmatprep.mubr.msk.f32.mxu0 %vm1322_vm0, %v1320_v0  ;;  %v334_v4 = vld [vmem:[#allocation7] sm:$0xff]  ;;  %v995_v5 = vpack.c.bf16 %v338_v3, %v335_v2  ;;  %v341_v7 = vld [vmem:[#allocation7 + $0x38] sm:$0xff]  ;;  %v340_v11 = vld [vmem:[#allocation7 + $0x30] sm:$0xff]  ;;  %v349_v22 = vshrl.u32 %v348_v21, 7  ;;  %s332_s13 = scalar_lea.vmem [#allocation10], %s1562_s4  ;;  %s1616_s17 = scalar_lea.hbm %s1666_s6, %s910_s2 }
  0x9c   : > { %v997_v9 = vpack.c.bf16 %v337_v6, %v334_v4  ;;  %v999_v10 = vpack.c.bf16 %v344_v8, %v341_v7  ;;  %v343_v12 = vld [vmem:[#allocation7 + $0x48] sm:$0xff]  ;;  %v336_v14 = vld [vmem:[#allocation7 + $0x10] sm:$0xff]  ;;  %v342_v18 = vld [vmem:[#allocation7 + $0x40] sm:$0xff]  ;;  %s778_s11 = sshll.u32 %s332_s13, 4  ;;  %s765_s9 = scalar_lea.sflag [#allocation4], %s1559_s14  ;;  %s1618_s11 = int_to_ptr.vmem [resolvable:$true] %s778_s11 }
  0x9d   : > { %996 = vmatprep.subr.bf16.mxu1 %v995_v5  ;;  %v1001_v13 = vpack.c.bf16 %v343_v12, %v340_v11  ;;  %v339_v15 = vld [vmem:[#allocation7 + $0x28] sm:$0xff]  ;;  %v345_v19 = vld [vmem:[#allocation7 + $0x58] sm:$0xff]  ;;  %v358_v25 = vsub.s32 2, %v349_v22  ;;  %v354_v26 = vsub.s32 1, %v349_v22  ;;  %v346_v27 = vld [vmem:[%s1663_s3] sm:$0x7] }
  0x9e   : > { %998 = vmatpush1.bf16.msra.mxu1 %v997_v9  ;;  %v333_v16 = vld [vmem:[%s282_s19] sm:$0xff]  ;;  %v1004_v17 = vpack.c.bf16 %v339_v15, %v336_v14  ;;  %v1007_v20 = vpack.c.bf16 %v345_v19, %v342_v18  ;;  %v350_v28 = vsub.s32 0, %v349_v22  ;;  %v581_v40 = vld [vmem:[%s291_s30] sm:$0xff]  ;;  %s1232_s7 = scalar_lea.vmem %s1618_s11, 128  ;;  %p1689_p13 = scmp.ne.s32.totalorder %s1681_s12, 0 }
  0x9f   : > { %1000 = vmatprep.subr.bf16.mxu1 %v999_v10  ;;  %v359_v29 = vrot.slane %v346_v27, %v358_v25  ;;  %v355_v30 = vrot.slane %v346_v27, %v354_v26  ;;  %vm582_vm2 = vcmp.gt.f32.partialorder %v581_v40, 0.0  ;;  %v669_v50 = vld [vmem:[#allocation8] sm:$0xff]  ;;  %v670_v51 = vld [vmem:[#allocation8 + $0x8] sm:$0xff]  ;;  %v671_v52 = vld [vmem:[#allocation8 + $0x10] sm:$0xff]  ;;  %p1233_p2 = scmp.ne.s32.totalorder %s1618_s11, %s1232_s7  ;;  %s1323_s25 = smov [#allocation10]  }
  0xa0   : > { %v351_v31 = vrot.slane %v346_v27, %v350_v28  ;;  %v1010_v53 = vpack.c.bf16 %v670_v51, %v669_v50  ;;  %v672_v54 = vld [vmem:[#allocation8 + $0x18] sm:$0xff]  ;;  %v673_v56 = vld [vmem:[#allocation8 + $0x20] sm:$0xff]  ;;  %v674_v57 = vld [vmem:[#allocation8 + $0x28] sm:$0xff]  ;;  %s1236_s4 = sshll.u32 %s1323_s25, 4  ;;  %s1237_s4 = int_to_ptr.vmem [resolvable:$false] %s1236_s4 }
  0xa1   : > { %v1013_v55 = vpack.c.bf16 %v672_v54, %v671_v52  ;;  %v1016_v58 = vpack.c.bf16 %v674_v57, %v673_v56  ;;  %v675_v59 = vld [vmem:[#allocation8 + $0x30] sm:$0xff]  ;;  %v676_v60 = vld [vmem:[#allocation8 + $0x38] sm:$0xff]  ;;  %v677_v62 = vld [vmem:[#allocation8 + $0x40] sm:$0xff]  ;;  %p1234_p6 = pnand %p1233_p2, %p1689_p13  ;;  %s1238_s19 = scalar_lea.vmem %s1237_s4, 256 }
  0xa2   : > { %1002 = vmatpush1.bf16.msra.mxu1 %v1001_v13  ;;  %1011 = vmatpush3.bf16.msra.mxu0 %v1010_v53  ;;  %v1019_v61 = vpack.c.bf16 %v676_v60, %v675_v59  ;;  %v678_v63 = vld [vmem:[#allocation8 + $0x48] sm:$0xff]  ;;  %v679_v2 = vld [vmem:[#allocation8 + $0x50] sm:$0xff]  ;;  %v680_v3 = vld [vmem:[#allocation8 + $0x58] sm:$0xff]  ;;  %p1239_p4 = scmp.lt.s32.totalorder %s1618_s11, %s1237_s4  ;;  %p1240_p7 = scmp.lt.s32.totalorder %s1238_s19, %s1232_s7 }
  0xa3   : > { %1003 = vmatprep.subr.bf16.mxu1 %v1321_v1  ;;  %1012 = vmatprep.subr.bf16.mxu0 %v1321_v1  ;;  %v1025_v4 = vpack.c.bf16 %v680_v3, %v679_v2  ;;  %v681_v5 = vld [vmem:[#allocation8 + $0x60] sm:$0xff]  ;;  %v682_v6 = vld [vmem:[#allocation8 + $0x68] sm:$0xff]  ;;  %v683_v8 = vld [vmem:[#allocation8 + $0x70] sm:$0xff]  ;;  %p1235_p10 = pneg %p1234_p6 }
  0xa4   : > { %v1028_v7 = vpack.c.bf16 %v682_v6, %v681_v5  ;;  %v684_v9 = vld [vmem:[#allocation8 + $0x78] sm:$0xff]  ;;  %p1241_p3 = por %p1240_p7, %p1239_p4 }
  0xa5   : > { %905 = vmatmul.mubr.msk.f32.vlgmr.msra.gmra.mrb[0].mxu1 %vm363_vm1, %v333_v16  ;;  %v1031_v10 = vpack.c.bf16 %v684_v9, %v683_v8 }
  0xa6   : > { %1005 = vmatpush3.bf16.msra.mxu1 %v1004_v17  ;;  %947 = vmatprep.mubr.msk.f32.mxu1 %vm1322_vm0, %v1320_v0  ;;  %p1242_p5 = pnand %p1241_p3, %p1235_p10 }
  0xa7   : > { %1006 = vmatprep.subr.bf16.mxu1 %v1321_v1  ;;  %1014 = vmatpush3.bf16.msra.mxu0 %v1013_v55 }
  0xa8   : > { %1015 = vmatprep.subr.bf16.mxu0 %v1321_v1 }
  0xaa   : > { %1008 = vmatpush3.bf16.msra.mxu1 %v1007_v20 }
  0xab   : > { %950 = vmatprep.subr.mxu1 %v1320_v0  ;;  %1017 = vmatpush3.bf16.msra.mxu0 %v1016_v58 }
  0xac   : > { %1018 = vmatprep.subr.bf16.mxu0 %v1321_v1 }
  0xad   : > { %948 = vmatmul.mubr.msk.f32.vlgmr.msra.gmra.mrb[2].mxu1 %vm363_vm1, %v333_v16  ;;  %v908_v16 = vld [vmem:[%s1665_s5] ss:$0 sm:$0xff] }
  0xae   : > { %952 = vmatprep.mubr.msk.f32.mxu1 %vm1322_vm0, %v1320_v0 }
  0xaf   : > { %1020 = vmatpush3.bf16.msra.mxu0 %v1019_v61 }
  0xb0   : > { %1021 = vmatprep.subr.bf16.mxu0 %v1321_v1 }
 0x178   : > { %v433_v23 = vpop.f32.mrb[0].mxu1 }
 0x179   : > { %v435_v24 = vpop.f32.mrb[1].mxu1  ;;  %v434_v36 = vadd.f32 %v433_v23, %v351_v31 }
 0x17a   : > { %v436_v35 = vadd.f32 %v435_v24, %v355_v30 }
 0x17b   : > { %v508_v39 = vmax.f32 %v434_v36, 0.0 }
 0x17c   : > { %v509_v38 = vmax.f32 %v436_v35, 0.0 }
 0x180   : > { %v504_v32 = vpop.f32.mrb[2].mxu1 }
 0x181   : > { %v505_v33 = vadd.f32 %v504_v32, %v359_v29  ;;  %v949_v34 = vpop.f32.mrb[3].mxu1 }
 0x183   : > { %v510_v37 = vmax.f32 %v505_v33, 0.0 }
 0x185   : > { %951 = vmatpush3.xpose.msra.mxu1 %v510_v37 }
 0x186   : > { %955 = vmatprep.subr.mxu1 %v1320_v0 }
 0x188   : > { %953 = vmatmul.mubr.f32.vlgmr.msra.gmra.mrb[4].mxu1 %v509_v38 }
 0x189   : > { %956 = vmatpush3.msra.mxu1 %v508_v39  ;;  %957 = vmatprep.mubr.msk.f32.mxu1 %vm1322_vm0, %v1320_v0  ;;  %v1022_v0 = vpack.c.bf16 %v678_v63, %v677_v62 }
 0x18b   : > { %1023 = vmatpush3.bf16.msra.mxu0 %v1022_v0 }
 0x18c   : > { %1024 = vmatprep.subr.bf16.mxu0 %v1321_v1 }
 0x18f   : > { %1026 = vmatpush3.bf16.msra.mxu0 %v1025_v4 }
 0x190   : > { %1027 = vmatprep.subr.bf16.mxu0 %v1321_v1 }
 0x193   : > { %1029 = vmatpush3.bf16.msra.mxu0 %v1028_v7 }
 0x194   : > { %1030 = vmatprep.subr.bf16.mxu0 %v1321_v1 }
 0x197   : > { %1032 = vmatpush3.bf16.msra.mxu0 %v1031_v10 }
 0x25b   : > { %v577_v41 = vpop.f32.mrb[4].mxu1 }
 0x25c   : > { %v583_v42 = vsel %vm582_vm2, %v577_v41, -9e+15  ;;  %v954_v43 = vpop.f32.mrb[5].mxu1 }
 0x25d   : > { %v585_v44 = vsel %vm584_vm3, %v583_v42, -inf }
 0x25e   : > { %586 = vmax.xlane.f32.xlu0 %v585_v44 }
 0x2eb   : > { %v587_v45 = vpop.xlane.xlu0 %586 }
 0x2ec   : > { %v588_v46 = vsub.f32 %v583_v42, %v587_v45 }
 0x2ee   : > { %v589_v47 = vmul.f32 1.442695, %v588_v46 }
 0x2f0   : > { %1112 = vpow2.f32 %v589_v47 }
 0x2fa   : > { %v1113_v48 = vpop.eup %1112 }
 0x2fb   : > { %v591_v49 = vsel %vm584_vm3, %v1113_v48, 0.0 }
 0x2fc   : > { %592 = vadd.xlane.f32.xlu0 %v591_v49 }
 0x389   : > { %v593_v11 = vpop.xlane.xlu0 %592 }
 0x38a   : > { %1114 = vrcp.f32 %v593_v11 }
 0x394   : > { %v1115_v12 = vpop.eup %1114 }
 0x395   : > { %v595_v13 = vmul.f32 %v1115_v12, %v1113_v48 }
 0x397   : > { %958 = vmatmul.mubr.msk.f32.vlgmr.msra.gmra.mrb[6].mxu1 %vm584_vm3, %v595_v13 }
 0x46a   : > { %v665_v14 = vpop.f32.mrb[6].mxu1 }
 0x46b   : > { %v959_v15 = vpop.f32.mrb[7].mxu1  ;;  %993 = vmatmul.mubr.f32.vlgmr.msra.gmra.mrb[0].mxu0 %v665_v14 }
 0x53e   : > { %v758_v17 = vpop.f32.mrb[0].mxu0 }
 0x53f   : > { %v759_v1 = vadd.f32 %v908_v16, %v758_v17  ;;  %v994_v18 = vpop.f32.mrb[1].mxu0 }
 0x541   : > { %v762_v19 = vmax.f32 %v759_v1, 0.0 }
 0x543   : > { %763 = vst [vmem:[%s332_s13] sm:$0xff] %v762_v19 }
 0x544   : > { %1245 = shalt.err (!%p1242_p5)
}
 0x545   : > { %s1246_s14 = scalar_lea.hbm %s1616_s17, 128  ;;  %s1250_s30 = scalar_lea.hbm %s1666_s6, 256 }
 0x546   : > { %p1247_p1 = scmp.ne.s32.totalorder %s1616_s17, %s1246_s14  ;;  %p1251_p0 = scmp.lt.u32.totalorder %s1616_s17, %s1666_s6 }
 0x547   : > { %p1252_p9 = scmp.lt.u32.totalorder %s1250_s30, %s1246_s14  ;;  %p1254_p2 = scmp.lt.u32.totalorder %s1246_s14, %s1616_s17 }
 0x548   : > { %p1248_p8 = pnand %p1247_p1, %p1689_p13 }
 0x549   : > { %p1253_p12 = por %p1252_p9, %p1251_p0 }
 0x54a   : > { %p1249_p11 = pneg %p1248_p8 }
 0x54b   : > { %p1255_p6 = por %p1254_p2, %p1253_p12 }
 0x54d   : > { %p1256_p10 = pnand %p1255_p6, %p1249_p11 }
 0x54f   : > { %1259 = shalt.err (!%p1256_p10)
}
 0x550   : > { %1045 = dma.vmem_to_hbm [thread:$0]  (%p1689_p13), %s1618_s11, 128, %s1616_s17, %s765_s9  }
 0x551 PF: > { %s790_s15 = sand.u32 1, %s1298_s21   ;;  %p1690_p4 = scmp.ne.s32.totalorder %s1674_s28, 0 }
 0x552   : > { %p1691_p7 = scmp.ge.s32.totalorder %s1310_s24, 2  ;;  %s791_s8 = scalar_lea.sflag [#allocation4], %s790_s15 }
 0x554   : > { %p1062_p3 = pnand %p1691_p7, %p1690_p4 }
 0x556   : > { %1293 = dma.done.wait (!%p1062_p3), %s791_s8, 128  }
 0x557   : > { %1295 = vsyncadd (!%p1062_p3), %s791_s8, 4294967168  ;;  %s1692_s2 = sld [smem:[#allocation16_spill]]  ;;  %p23_p5 = scmp.ge.s32.totalorder %s1469_s26, 4  }
 0x558   : > { %s1693_s21 = smov %s1302_s22  ;;  %s1694_s22 = smov %s1306_s23 }
 0x559   : > { %s1696_s24 = smov %s1469_s26  ;;  %25 = sbr.rel (!%p23_p5) target bundleno = 11 (0xb), region = 110 }
 0x55d   : > { %s1695_s23 = smov %s1692_s2 }
 0x560   :  { %796 = vsyncpa [#allocation3], 1 }
 0x561   :  { %798 = vsyncpa [#allocation3 + $0x1], 1 }
 0x562   :  { %799 = vsyncpa [#allocation6], 1 }
 0x563   :  { %801 = vsyncpa [#allocation6 + $0x1], 1 }
 0x564   :  { %802 = vsyncpa [#allocation9], 1 }
 0x565   :  { %803 = vsyncpa [#allocation4], 1 }
 0x566   :  { %805 = vsyncpa [#allocation4 + $0x1], 1 }

</bundles_post_ra>
